<compile_context>
chip_gen: v5e
topology: v5e:2x2
jax: 0.10.0
libtpu: 0.0.40
codegen_flags: <defaults>
</compile_context>

<pallas_src>
import numpy as np
import jax
import jax.numpy as jnp
from jax import lax
from jax.experimental import pallas as pl
from jax.experimental.pallas import tpu as pltpu

EPS = 1e-15          # geoopt-style clamp_min epsilon (0/0 guard on s = sqrt|k|*norm)
PROJ_EPS = 4e-3      # float32 projection epsilon (geoopt _project)
ARTANH_CLIP = 1.0 - 1e-7
_CHUNK = 512         # rows per inner compute chunk (bounds live VMEM temporaries)


# ---------------------------------------- Pallas kernel ----------------------------------------
def _make_kernel(k_negative, act, max_norm, rc, n_chunks):
    max_norm = float(max_norm)

    def kernel(x_ref, red_ref, bc_ref, o_ref):
        red = red_ref[...]            # (D, Hp) f32 : |k_h| on head-membership entries (reduce)
        bc = bc_ref[...]              # (Hp, D) bf16: 0/1 head membership (broadcast)

        def chunk(c, carry):
            rows = pl.ds(pl.multiple_of(c * rc, rc), rc)
            x = x_ref[rows, :].astype(jnp.float32)                         # (rc, D) lane-dense

            # ---- logmap0(x,k): per-head scale artan_k(||x||,k)/||x|| = artanh(s)/s,
            #      s = sqrt(|k_h|)*||x_h||  (|k_h| folded into `red`) ----
            s2 = jnp.dot(x * x, red, preferred_element_type=jnp.float32,
                         precision=lax.Precision.HIGHEST)                  # (rc, Hp) MXU reduce
            s = jnp.maximum(jnp.sqrt(s2), EPS)
            inv_s = pl.reciprocal(s, approx=False)
            if k_negative:
                sc = jnp.minimum(s, ARTANH_CLIP)
                ath = 0.5 * jnp.log((1.0 + sc) * pl.reciprocal(1.0 - sc, approx=False))
                log_scale = ath * inv_s
            else:
                # TODO(synk): spherical (k > 0) branch uses jnp.arctan/jnp.tan; untested under Mosaic.
                log_scale = jnp.arctan(s) * inv_s
            # per-head -> per-lane broadcast as a single-pass bf16 MXU matmul;
            # the `1 + dot(scale - 1, M)` form keeps it accurate at bf16 for scales near 1.
            lf = 1.0 + jnp.dot((log_scale - 1.0).astype(jnp.bfloat16), bc,
                               preferred_element_type=jnp.float32)         # (rc, D)
            u = x * lf

            # ---- act + clamp(max=max_norm)  (elementwise, lane-dense) ----
            u = jnp.minimum(act(u), max_norm)

            # ---- expmap0(u,k) + proj(.,k) folded into one per-head multiplier ----
            t2 = jnp.dot(u * u, red, preferred_element_type=jnp.float32,
                         precision=lax.Precision.HIGHEST)                  # (rc, Hp)
            su = jnp.maximum(jnp.sqrt(t2), EPS)
            inv_su = pl.reciprocal(su, approx=False)
            if k_negative:
                tk = jnp.tanh(su)                       # = sqrt|k_h| * ||expmap0(u)_h||
                exp_scale = tk * inv_su
                sv = jnp.maximum(tk, EPS)
                proj_scale = jnp.where(sv > (1.0 - PROJ_EPS),
                                       (1.0 - PROJ_EPS) * pl.reciprocal(sv, approx=True),
                                       1.0)
                m = exp_scale * proj_scale
            else:
                # TODO(synk): spherical proj never binds (reference maxnorm = 1e15), so skip it.
                m = jnp.tan(su) * inv_su
            mf = 1.0 + jnp.dot((m - 1.0).astype(jnp.bfloat16), bc,
                               preferred_element_type=jnp.float32)
            o_ref[rows, :] = (u * mf).astype(o_ref.dtype)                  # lane-dense store
            return carry

        lax.fori_loop(0, n_chunks, chunk, 0)

    return kernel


# ------------------------------------------- wrapper -------------------------------------------
def _normalize_curv(curv, num_heads):
    curv = np.asarray(curv, dtype=np.float32).reshape(-1)
    if curv.size == 1:                      # mirrors `curv.repeat(num_heads)` in the torch forward
        curv = np.repeat(curv, num_heads)
    assert curv.shape == (num_heads,)
    if np.all(curv < 0):
        return curv, True
    if np.all(curv > 0):
        return curv, False
    # TODO(synk): mixed-sign / zero-curvature Taylor dispatch of tan_k/artan_k not implemented.
    raise NotImplementedError("all per-head curvatures must share a nonzero sign")


def _round_up(v, m):
    return -(-v // m) * m


def _tpu_vmem_bytes():
    try:
        return int(getattr(pltpu.get_tpu_info(), "vmem_capacity_bytes", 64 << 20))
    except Exception:
        return 64 << 20          # conservative fallback (treat as v7x-class)


def _pick_batch_tile(B, D, io_bytes, batch_tile=None):
    """Rows per grid step (multiple of _CHUNK when tiled) and the vmem limit to request."""
    vmem = _tpu_vmem_bytes()
    small_vmem = vmem <= (64 << 20)                    # v7x-class TensorCore (64 MiB VMEM)
    vmem_limit = (48 << 20) if small_vmem else (96 << 20)
    if B <= _CHUNK:
        return B, vmem_limit                           # one small full-array block
    cap = batch_tile if batch_tile is not None else (4096 if small_vmem else 8192)
    # DMA footprint only (double-buffered in + out); the inner _CHUNK-row loop bounds
    # live f32 compute temporaries to a few MiB regardless of the tile height.
    budget = (40 << 20) if small_vmem else (80 << 20)
    per_row = 4 * D * io_bytes + 64
    cap = min(cap, budget // per_row)
    cap = max(_CHUNK, (cap // _CHUNK) * _CHUNK)
    if small_vmem:
        # keep >= 2 grid steps so both v7x TensorCores get work under "parallel"
        cap = min(cap, max(_CHUNK, _round_up(pl.cdiv(B, 2), _CHUNK)))
    tb = min(cap, max(_CHUNK, (B // _CHUNK) * _CHUNK))
    return tb, vmem_limit


def stereographic_act(x, curv, num_heads, *, act=jax.nn.relu, max_norm=1e6, batch_tile=None):
    """Pallas forward of StereographicAct.

    x    : (B, D) float (f32 or bf16; I/O stays in this dtype), D % num_heads == 0
    curv : scalar / length-1 / (num_heads,) concrete curvatures (sign fixed at trace time)
    act  : elementwise activation baked into the kernel (default relu)
    """
    B, D = x.shape
    H = num_heads
    assert D % H == 0
    Dh = D // H
    curv, k_negative = _normalize_curv(curv, H)

    # Head-membership matrices for the MXU segment-reduce / broadcast.
    # Head axis padded to exactly one 128-lane vreg width (never beyond what's needed).
    Hp = _round_up(H, 128)
    head_of = np.repeat(np.arange(H), Dh)                     # (D,)
    red_np = np.zeros((D, Hp), np.float32)
    red_np[np.arange(D), head_of] = np.abs(curv)[head_of]     # fold |k_h|: s^2 = |k_h|*||x_h||^2
    bc_np = np.zeros((Hp, D), np.float32)
    bc_np[head_of, np.arange(D)] = 1.0
    red = jnp.asarray(red_np)                                 # f32 resident (reduce side)
    bc = jnp.asarray(bc_np, jnp.bfloat16)                     # bf16 resident (0/1 is exact)

    TB, vmem_limit = _pick_batch_tile(B, D, jnp.dtype(x.dtype).itemsize, batch_tile)
    rc = TB if TB <= _CHUNK else _CHUNK
    assert TB % rc == 0
    n_chunks = TB // rc

    return pl.pallas_call(
        _make_kernel(k_negative, act, max_norm, rc, n_chunks),
        out_shape=jax.ShapeDtypeStruct((B, D), x.dtype),       # keep caller's dtype
        grid_spec=pltpu.PrefetchScalarGridSpec(
            num_scalar_prefetch=0,
            grid=(pl.cdiv(B, TB),),                            # ragged last block handled by Pallas
            in_specs=[
                pl.BlockSpec((TB, D), lambda i: (i, 0)),       # x batch tile (lane-dense)
                pl.BlockSpec((D, Hp), lambda i: (0, 0)),       # reduce matrix (resident, f32)
                pl.BlockSpec((Hp, D), lambda i: (0, 0)),       # broadcast matrix (resident, bf16)
            ],
            out_specs=pl.BlockSpec((TB, D), lambda i: (i, 0)),
        ),
        compiler_params=pltpu.CompilerParams(
            dimension_semantics=("parallel",),
            vmem_limit_bytes=vmem_limit,
        ),
    )(x, red, bc)


# -------------------------------------- pure-JAX reference --------------------------------------
def stereographic_act_ref(x, curv, num_heads, *, act=jax.nn.relu, max_norm=1e6):
    B, D = x.shape
    H = num_heads
    Dh = D // H
    curv, k_negative = _normalize_curv(curv, H)
    c = jnp.asarray(curv).reshape(1, H, 1)
    sqk = jnp.sqrt(jnp.abs(c))

    xh = jnp.asarray(x, jnp.float32).reshape(B, H, Dh)
    xn = jnp.maximum(jnp.sqrt(jnp.sum(xh * xh, -1, keepdims=True)), EPS)
    s = sqk * xn
    if k_negative:
        sc = jnp.minimum(s, ARTANH_CLIP)
        log_scale = 0.5 * jnp.log((1.0 + sc) / (1.0 - sc)) / s
    else:
        log_scale = jnp.arctan(s) / s
    u = jnp.minimum(act(xh * log_scale), max_norm)            # logmap0 -> act -> clamp(max=)
    un = jnp.maximum(jnp.sqrt(jnp.sum(u * u, -1, keepdims=True)), EPS)
    su = sqk * un
    exp_scale = (jnp.tanh(su) if k_negative else jnp.tan(su)) / su
    y = u * exp_scale                                         # expmap0
    yn = jnp.maximum(jnp.sqrt(jnp.sum(y * y, -1, keepdims=True)), EPS)
    maxnorm = jnp.where(c < 0, (1.0 - PROJ_EPS) / sqk, 1e15)
    y = jnp.where(yn > maxnorm, y / yn * maxnorm, y)          # proj
    return y.reshape(B, D)


if __name__ == "__main__":
    B, H, DH = 16, 4, 32
    D = H * DH               # input_dim = 128

    key = jax.random.PRNGKey(0)
    k1, k2, k3 = jax.random.split(key, 3)

    def _f32(a):
        return np.asarray(jnp.asarray(a, jnp.float32))

    # (a) length-1 curvature (exercises the curv.repeat path), relu, f32 I/O.
    x1 = 0.05 * jax.random.normal(k1, (B, D), jnp.float32)
    curv1 = np.array([-1.0], np.float32)
    out1 = jax.block_until_ready(stereographic_act(x1, curv1, H))
    ref1 = stereographic_act_ref(x1, curv1, H)
    np.testing.assert_allclose(_f32(out1), _f32(ref1), rtol=1e-3, atol=1e-6)
    assert out1.shape == (B, D) and out1.dtype == x1.dtype

    # (b) distinct per-head negative curvatures, per-head norm 0.3, small max_norm
    #     so the tangent clamp actually binds.
    curv2 = np.array([-0.5, -1.0, -2.0, -4.0], np.float32)
    xr = jax.random.normal(k2, (B, H, DH), jnp.float32)
    xr = 0.3 * xr / jnp.linalg.norm(xr, axis=-1, keepdims=True)
    x2 = xr.reshape(B, D)
    out2 = jax.block_until_ready(stereographic_act(x2, curv2, H, max_norm=0.1))
    ref2 = stereographic_act_ref(x2, curv2, H, max_norm=0.1)
    np.testing.assert_allclose(_f32(out2), _f32(ref2), rtol=1e-3, atol=1e-6)

    # (c) ragged batch: exercises the cdiv grid, the inner chunk loop and masked writeback.
    x3 = 0.04 * jax.random.normal(k3, (1100, D), jnp.float32)
    out3 = jax.block_until_ready(stereographic_act(x3, curv2, H))
    ref3 = stereographic_act_ref(x3, curv2, H)
    assert out3.shape == (1100, D)
    np.testing.assert_allclose(_f32(out3), _f32(ref3), rtol=1e-3, atol=1e-6)

    # (d) bf16 I/O path (kernel upcasts internally, stores bf16 — no f32 forcing at the boundary).
    x4 = x1.astype(jnp.bfloat16)
    out4 = jax.block_until_ready(stereographic_act(x4, curv1, H))
    assert out4.dtype == jnp.bfloat16
    ref4 = stereographic_act_ref(x4.astype(jnp.float32), curv1, H)
    np.testing.assert_allclose(_f32(out4), _f32(ref4), rtol=5e-3, atol=1e-4)

    print("KERNEL_OK")
</pallas_src>

<mosaic_0001>
module attributes {stable_mosaic.version = 11 : i64} {
  func.func @kernel(%arg0: i32, %arg1: memref<16x128xf32, #tpu.memory_space<vmem>>, %arg2: memref<128x128xf32, #tpu.memory_space<vmem>>, %arg3: memref<128x128xbf16, #tpu.memory_space<vmem>>, %arg4: memref<16x128xf32, #tpu.memory_space<vmem>>) attributes {dimension_semantics = [#tpu.dimension_semantics<parallel>], iteration_bounds = array<i64: 1>, scalar_prefetch = 0 : i64, scratch_operands = 0 : i64, tpu.core_type = #tpu.core_type<tc>, window_params = [{transform_indices = @transform_0, window_bounds = array<i64: 16, 128>}, {pipeline_mode = #tpu.pipeline_mode<synchronous>, transform_indices = @transform_1, window_bounds = array<i64: 128, 128>}, {pipeline_mode = #tpu.pipeline_mode<synchronous>, transform_indices = @transform_2, window_bounds = array<i64: 128, 128>}, {transform_indices = @transform_3, window_bounds = array<i64: 16, 128>}]} {
    %c0 = arith.constant 0 : index
    %c0_0 = arith.constant 0 : index
    %0 = vector.load %arg2[%c0, %c0_0] : memref<128x128xf32, #tpu.memory_space<vmem>>, vector<128x128xf32>
    %c0_1 = arith.constant 0 : index
    %c0_2 = arith.constant 0 : index
    %1 = vector.load %arg3[%c0_1, %c0_2] : memref<128x128xbf16, #tpu.memory_space<vmem>>, vector<128x128xbf16>
    %c0_i32 = arith.constant 0 : i32
    %c16_i32 = arith.constant 16 : i32
    %2 = arith.muli %c0_i32, %c16_i32 : i32
    %3 = tpu.assume_multiple %2, 16 : i32
    %4 = arith.index_cast %3 : i32 to index
    %c0_3 = arith.constant 0 : index
    %5 = vector.load %arg1[%4, %c0_3] : memref<16x128xf32, #tpu.memory_space<vmem>>, vector<16x128xf32>
    %6 = arith.mulf %5, %5 : vector<16x128xf32>
    %cst = arith.constant dense<0.000000e+00> : vector<16x128xf32>
    %7 = tpu.matmul %6, %0, %cst {dimension_numbers = #tpu.dot_dimension_numbers<[1], [0], [0], [1], [0, 0, 1, 1], [], []>, precision = #tpu.contract_precision<fp32>} : vector<16x128xf32>, vector<128x128xf32>, vector<16x128xf32> -> vector<16x128xf32>
    %8 = math.sqrt %7 : vector<16x128xf32>
    %cst_4 = arith.constant 1.000000e-15 : f32
    %9 = vector.broadcast %cst_4 : f32 to vector<16x128xf32>
    %10 = arith.maximumf %8, %9 : vector<16x128xf32>
    %11 = tpu.reciprocal %10 : vector<16x128xf32> -> vector<16x128xf32>
    %cst_5 = arith.constant 0.99999988 : f32
    %12 = vector.broadcast %cst_5 : f32 to vector<16x128xf32>
    %13 = arith.minimumf %10, %12 : vector<16x128xf32>
    %cst_6 = arith.constant 1.000000e+00 : f32
    %14 = vector.broadcast %cst_6 : f32 to vector<16x128xf32>
    %15 = arith.addf %14, %13 : vector<16x128xf32>
    %cst_7 = arith.constant 1.000000e+00 : f32
    %16 = vector.broadcast %cst_7 : f32 to vector<16x128xf32>
    %17 = arith.subf %16, %13 : vector<16x128xf32>
    %18 = tpu.reciprocal %17 : vector<16x128xf32> -> vector<16x128xf32>
    %19 = arith.mulf %15, %18 : vector<16x128xf32>
    %20 = math.log %19 : vector<16x128xf32>
    %cst_8 = arith.constant 5.000000e-01 : f32
    %21 = vector.broadcast %cst_8 : f32 to vector<16x128xf32>
    %22 = arith.mulf %21, %20 : vector<16x128xf32>
    %23 = arith.mulf %22, %11 : vector<16x128xf32>
    %cst_9 = arith.constant 1.000000e+00 : f32
    %24 = vector.broadcast %cst_9 : f32 to vector<16x128xf32>
    %25 = arith.subf %23, %24 : vector<16x128xf32>
    %26 = arith.truncf %25 : vector<16x128xf32> to vector<16x128xbf16>
    %cst_10 = arith.constant dense<0.000000e+00> : vector<16x128xf32>
    %27 = tpu.matmul %26, %1, %cst_10 {dimension_numbers = #tpu.dot_dimension_numbers<[1], [0], [0], [1], [0, 0, 1, 1], [], []>} : vector<16x128xbf16>, vector<128x128xbf16>, vector<16x128xf32> -> vector<16x128xf32>
    %cst_11 = arith.constant 1.000000e+00 : f32
    %28 = vector.broadcast %cst_11 : f32 to vector<16x128xf32>
    %29 = arith.addf %28, %27 : vector<16x128xf32>
    %30 = arith.mulf %5, %29 : vector<16x128xf32>
    %cst_12 = arith.constant 0.000000e+00 : f32
    %31 = vector.broadcast %cst_12 : f32 to vector<16x128xf32>
    %32 = arith.maximumf %30, %31 : vector<16x128xf32>
    %cst_13 = arith.constant 1.000000e+06 : f32
    %33 = vector.broadcast %cst_13 : f32 to vector<16x128xf32>
    %34 = arith.minimumf %32, %33 : vector<16x128xf32>
    %35 = arith.mulf %34, %34 : vector<16x128xf32>
    %cst_14 = arith.constant dense<0.000000e+00> : vector<16x128xf32>
    %36 = tpu.matmul %35, %0, %cst_14 {dimension_numbers = #tpu.dot_dimension_numbers<[1], [0], [0], [1], [0, 0, 1, 1], [], []>, precision = #tpu.contract_precision<fp32>} : vector<16x128xf32>, vector<128x128xf32>, vector<16x128xf32> -> vector<16x128xf32>
    %37 = math.sqrt %36 : vector<16x128xf32>
    %cst_15 = arith.constant 1.000000e-15 : f32
    %38 = vector.broadcast %cst_15 : f32 to vector<16x128xf32>
    %39 = arith.maximumf %37, %38 : vector<16x128xf32>
    %40 = tpu.reciprocal %39 : vector<16x128xf32> -> vector<16x128xf32>
    %41 = math.tanh %39 : vector<16x128xf32>
    %42 = arith.mulf %41, %40 : vector<16x128xf32>
    %cst_16 = arith.constant 1.000000e-15 : f32
    %43 = vector.broadcast %cst_16 : f32 to vector<16x128xf32>
    %44 = arith.maximumf %41, %43 : vector<16x128xf32>
    %cst_17 = arith.constant 0.995999991 : f32
    %45 = vector.broadcast %cst_17 : f32 to vector<16x128xf32>
    %46 = arith.cmpf ogt, %44, %45 : vector<16x128xf32>
    %47 = tpu.reciprocal %44 {approx = true} : vector<16x128xf32> -> vector<16x128xf32>
    %cst_18 = arith.constant 0.995999991 : f32
    %48 = vector.broadcast %cst_18 : f32 to vector<16x128xf32>
    %49 = arith.mulf %48, %47 : vector<16x128xf32>
    %cst_19 = arith.constant 1.000000e+00 : f32
    %50 = vector.broadcast %cst_19 : f32 to vector<16x128xf32>
    %51 = arith.select %46, %49, %50 : vector<16x128xi1>, vector<16x128xf32>
    %52 = arith.mulf %42, %51 : vector<16x128xf32>
    %cst_20 = arith.constant 1.000000e+00 : f32
    %53 = vector.broadcast %cst_20 : f32 to vector<16x128xf32>
    %54 = arith.subf %52, %53 : vector<16x128xf32>
    %55 = arith.truncf %54 : vector<16x128xf32> to vector<16x128xbf16>
    %cst_21 = arith.constant dense<0.000000e+00> : vector<16x128xf32>
    %56 = tpu.matmul %55, %1, %cst_21 {dimension_numbers = #tpu.dot_dimension_numbers<[1], [0], [0], [1], [0, 0, 1, 1], [], []>} : vector<16x128xbf16>, vector<128x128xbf16>, vector<16x128xf32> -> vector<16x128xf32>
    %cst_22 = arith.constant 1.000000e+00 : f32
    %57 = vector.broadcast %cst_22 : f32 to vector<16x128xf32>
    %58 = arith.addf %57, %56 : vector<16x128xf32>
    %59 = arith.mulf %34, %58 : vector<16x128xf32>
    %60 = arith.index_cast %3 : i32 to index
    %c0_23 = arith.constant 0 : index
    %61 = vector.load %arg4[%60, %c0_23] : memref<16x128xf32, #tpu.memory_space<vmem>>, vector<16x128xf32>
    tpu.vector_store %arg4[%60, %c0_23], %59 {strides = array<i32>} : memref<16x128xf32, #tpu.memory_space<vmem>>, vector<16x128xf32>,
    %c1_i32 = arith.constant 1 : i32
    return
  }
  func.func @transform_0(%arg0: i32) -> (i32, i32) {
    %c0_i32 = arith.constant 0 : i32
    %c0_i32_0 = arith.constant 0 : i32
    return %arg0, %c0_i32 : i32, i32
  }
  func.func @transform_1(%arg0: i32) -> (i32, i32) {
    %c0_i32 = arith.constant 0 : i32
    %c0_i32_0 = arith.constant 0 : i32
    %c0_i32_1 = arith.constant 0 : i32
    return %c0_i32, %c0_i32_0 : i32, i32
  }
  func.func @transform_2(%arg0: i32) -> (i32, i32) {
    %c0_i32 = arith.constant 0 : i32
    %c0_i32_0 = arith.constant 0 : i32
    %c0_i32_1 = arith.constant 0 : i32
    return %c0_i32, %c0_i32_0 : i32, i32
  }
  func.func @transform_3(%arg0: i32) -> (i32, i32) {
    %c0_i32 = arith.constant 0 : i32
    %c0_i32_0 = arith.constant 0 : i32
    return %arg0, %c0_i32 : i32, i32
  }
}

</mosaic_0001>

<bundles_post_ra>
// kernel: tpu_custom_call.1
= control target key start
LH: loop header
LB: loop body
LE: loop exit
PB: predicated region body
PF: predicated region fallthrough
CT: control target
= control target key end

     0   :  { %8 = vsyncpa [#allocation3], 0  ;;  %s1837_s0 = inlined_call_operand.hbm [shape: f32[16,128], index: 0, kind: input, shape index: {}]   ;;  %s1838_s1 = inlined_call_operand.hbm [shape: f32[128,128], index: 1, kind: input, shape index: {}]   ;;  %s1839_s2 = inlined_call_operand.hbm [shape: bf16[128,128], index: 2, kind: input, shape index: {}]   ;;  %s1840_s3 = inlined_call_operand.hbm [shape: f32[16,128], index: 3, kind: output, shape index: {}]  }
   0x1   :  { %9 = vsyncpa [#allocation6], 0 }
   0x2   :  { %10 = vsyncpa [#allocation4], 0  ;;  %s28_s14 = sshll.u32 %s1838_s1, 4  ;;  %s1326_s15 = smov [#allocation5]   ;;  %s29_s14 = int_to_ptr.hbm [resolvable:$true] %s28_s14 }
   0x3   :  { %s30_s16 = sshll.u32 %s1326_s15, 4  ;;  %s15_s19 = sshll.u32 %s1837_s0, 4  ;;  %s31_s16 = int_to_ptr.vmem [resolvable:$true] %s30_s16  ;;  %s16_s19 = int_to_ptr.hbm [resolvable:$true] %s15_s19 }
   0x4   :  { %s1327_s20 = smov 128   ;;  %s1328_s21 = smov 8  }
   0x5   :  { %36 = dma.hbm_to_vmem [thread:$0]  %s29_s14, 2048, %s31_s16, [#allocation6], %s1327_s20, %s1327_s20, %s1328_s21  }
   0x6   :  { %s1329_s22 = smov [#allocation2]   ;;  %s41_s1 = sshll.u32 %s1839_s2, 4  ;;  %s42_s1 = int_to_ptr.hbm [resolvable:$true] %s41_s1 }
   0x7   :  { %s17_s23 = sshll.u32 %s1329_s22, 4  ;;  %s1330_s0 = smov [#allocation7]   ;;  %s18_s23 = int_to_ptr.vmem [resolvable:$true] %s17_s23 }
   0x8   :  { %23 = dma.hbm_to_vmem [thread:$0]  %s16_s19, 256, %s18_s23, [#allocation3], %s1327_s20, %s1327_s20, %s1328_s21  }
   0x9   :  { %s43_s26 = sshll.u32 %s1330_s0, 4  ;;  %s1331_s27 = smov 64   ;;  %s44_s26 = int_to_ptr.vmem [resolvable:$true] %s43_s26 }
   0xa   :  { %s1332_s28 = smov 4  }
   0xb   :  { %49 = dma.hbm_to_vmem [thread:$0]  %s42_s1, 1024, %s44_s26, [#allocation6], %s1331_s27, %s1331_s27, %s1332_s28  }
   0xc   :  { %1320 = dma.done.wait [#allocation3], 256  }
   0xd   :  { %1321 = vsyncadd [#allocation3], 4294967040 }
   0xe   :  { %1322 = dma.done.wait [#allocation6], 3072  }
   0xf   :  { %1323 = vsyncadd [#allocation6], 4294964224  ;;  %v77_v0 = vld [vmem:[#allocation5 + $0x78] sm:$0xff]  ;;  %v76_v1 = vld [vmem:[#allocation5 + $0x70] sm:$0xff]  ;;  %s1333_s2 = smov [#allocation8]   ;;  %s1110_s5 = sshll.u32 %s1840_s3, 4  ;;  %s1111_s5 = int_to_ptr.hbm [resolvable:$true] %s1110_s5 }
  0x10   :  { %v75_v2 = vld [vmem:[#allocation5 + $0x68] sm:$0xff]  ;;  %v1369_v3 = vand.u32 4294901760, %v77_v0  ;;  %v1371_v4 = vand.u32 4294901760, %v76_v1  ;;  %v74_v6 = vld [vmem:[#allocation5 + $0x60] sm:$0xff]  ;;  %v73_v7 = vld [vmem:[#allocation5 + $0x58] sm:$0xff]  ;;  %s1108_s29 = sshll.u32 %s1333_s2, 4  ;;  %s1109_s29 = int_to_ptr.vmem [resolvable:$true] %s1108_s29 }
  0x11   :  { %v1373_v5 = vand.u32 4294901760, %v75_v2  ;;  %v72_v8 = vld [vmem:[#allocation5 + $0x50] sm:$0xff]  ;;  %v1375_v9 = vand.u32 4294901760, %v74_v6  ;;  %v1377_v10 = vand.u32 4294901760, %v73_v7  ;;  %v71_v12 = vld [vmem:[#allocation5 + $0x48] sm:$0xff]  ;;  %v70_v13 = vld [vmem:[#allocation5 + $0x40] sm:$0xff] }
  0x12   :  { %v1379_v11 = vand.u32 4294901760, %v72_v8  ;;  %99 = vmatpush.msra.mxu0 %v1369_v3  ;;  %v1383_v14 = vsub.f32 %v77_v0, %v1369_v3  ;;  %v1386_v15 = vsub.f32 %v76_v1, %v1371_v4  ;;  %v69_v17 = vld [vmem:[#allocation5 + $0x38] sm:$0xff]  ;;  %312 = vmatpush.msra.mxu3 %v1369_v3  ;;  %v1392_v18 = vand.u32 4294901760, %v71_v12  ;;  %v68_v25 = vld [vmem:[#allocation5 + $0x30] sm:$0xff]  ;;  %v67_v33 = vld [vmem:[#allocation5 + $0x28] sm:$0xff] }
  0x13   :  { %v1389_v16 = vsub.f32 %v75_v2, %v1373_v5  ;;  %v1395_v19 = vsub.f32 %v74_v6, %v1375_v9  ;;  %v1398_v20 = vsub.f32 %v73_v7, %v1377_v10  ;;  %v1410_v24 = vand.u32 4294901760, %v70_v13  ;;  %v66_v40 = vld [vmem:[#allocation5 + $0x20] sm:$0xff]  ;;  %v65_v46 = vld [vmem:[#allocation5 + $0x18] sm:$0xff]  ;;  %v64_v52 = vld [vmem:[#allocation5 + $0x10] sm:$0xff] }
  0x14   :  { %101 = vmatpush.msra.mxu0 %v1371_v4  ;;  %v1402_v21 = vand.u32 4294901760, %v1383_v14  ;;  %v1405_v22 = vand.u32 4294901760, %v1386_v15  ;;  %254 = vmatpush.msra.mxu2 %v1383_v14  ;;  %v1416_v27 = vand.u32 4294901760, %v69_v17  ;;  %v1419_v28 = vsub.f32 %v72_v8, %v1379_v11  ;;  %v63_v58 = vld [vmem:[#allocation5 + $0x8] sm:$0xff]  ;;  %v1504_v61 = vld [vmem:[#allocation2] sm:$0xff]  ;;  %v62_v1 = vld [vmem:[#allocation5] sm:$0xff] }
  0x15   :  { %v1408_v23 = vand.u32 4294901760, %v1389_v16  ;;  %v1414_v26 = vand.u32 4294901760, %v1395_v19  ;;  %314 = vmatpush.msra.mxu3 %v1371_v4  ;;  %v1430_v32 = vand.u32 4294901760, %v1398_v20  ;;  %v1435_v35 = vand.u32 4294901760, %v68_v25  ;;  %1859 = vst [vmem:[#allocation18_spill] sm:$0xff] %v1504_v61  ;;  %v1518_v6 = vld [vmem:[#allocation2 + $0x8] sm:$0xff] }
  0x16   :  { %1853 = vst [vmem:[#allocation12_spill] sm:$0xff] %v1419_v28  ;;  %103 = vmatpush.msra.mxu0 %v1373_v5  ;;  %v150_v29 = vsub.f32 %v1383_v14, %v1402_v21  ;;  %v156_v30 = vsub.f32 %v1386_v15, %v1405_v22  ;;  %257 = vmatpush.msra.mxu2 %v1386_v15  ;;  %v1447_v39 = vand.u32 4294901760, %v1419_v28  ;;  %v1453_v42 = vand.u32 4294901760, %v67_v33 }
  0x17   :  { %v162_v31 = vsub.f32 %v1389_v16, %v1408_v23  ;;  %v168_v34 = vsub.f32 %v1395_v19, %v1414_v26  ;;  %v1438_v36 = vsub.f32 %v71_v12, %v1392_v18  ;;  %316 = vmatpush.msra.mxu3 %v1373_v5  ;;  %v1451_v41 = vsub.f32 %v70_v13, %v1410_v24 }
  0x18   :  { %105 = vmatpush.msra.mxu0 %v1375_v9  ;;  %v1442_v37 = vand.u32 4294901760, %v150_v29  ;;  %v1444_v38 = vand.u32 4294901760, %v156_v30  ;;  %260 = vmatpush.msra.mxu2 %v1389_v16  ;;  %v174_v44 = vsub.f32 %v1398_v20, %v1430_v32  ;;  %v1466_v47 = vsub.f32 %v69_v17, %v1416_v27  ;;  %1861 = vst [vmem:[#allocation20_spill] sm:$0xff] %v1518_v6 }
  0x19   :  { %1854 = vst [vmem:[#allocation13_spill] sm:$0xff] %v1438_v36  ;;  %318 = vmatpush.msra.mxu3 %v1375_v9  ;;  %v1458_v43 = vand.u32 4294901760, %v162_v31  ;;  %v1463_v45 = vand.u32 4294901760, %v1438_v36  ;;  %v1468_v48 = vand.u32 4294901760, %v66_v40  ;;  %v1474_v49 = vand.u32 4294901760, %v168_v34 }
  0x1a   :  { %1855 = vst [vmem:[#allocation14_spill] sm:$0xff] %v1451_v41  ;;  %107 = vmatpush.msra.mxu0 %v1377_v10  ;;  %152 = vmatpush.msra.mxu1 %v1442_v37  ;;  %v180_v50 = vsub.f32 %v1419_v28, %v1447_v39  ;;  %v1479_v51 = vand.u32 4294901760, %v1451_v41  ;;  %v1482_v53 = vsub.f32 %v68_v25, %v1435_v35  ;;  %v1484_v54 = vand.u32 4294901760, %v65_v46 }
  0x1b   :  { %1856 = vst [vmem:[#allocation15_spill] sm:$0xff] %v1466_v47  ;;  %263 = vmatpush.msra.mxu2 %v1395_v19  ;;  %320 = vmatpush.msra.mxu3 %v1377_v10  ;;  %v1490_v55 = vand.u32 4294901760, %v174_v44  ;;  %v186_v56 = vsub.f32 %v1438_v36, %v1463_v45  ;;  %v1495_v57 = vand.u32 4294901760, %v1466_v47  ;;  %v1498_v59 = vsub.f32 %v67_v33, %v1453_v42 }
  0x1c   :  { %109 = vmatpush.msra.mxu0 %v1379_v11  ;;  %158 = vmatpush.msra.mxu1 %v1444_v38  ;;  %1857 = vst [vmem:[#allocation16_spill] sm:$0xff] %v1482_v53  ;;  %v1500_v60 = vand.u32 4294901760, %v64_v52  ;;  %v1508_v62 = vand.u32 4294901760, %v180_v50  ;;  %v192_v63 = vsub.f32 %v1451_v41, %v1479_v51  ;;  %v1513_v0 = vand.u32 4294901760, %v1482_v53 }
  0x1d   :  { %266 = vmatpush.msra.mxu2 %v1398_v20  ;;  %322 = vmatpush.msra.mxu3 %v1379_v11  ;;  %1858 = vst [vmem:[#allocation17_spill] sm:$0xff] %v1498_v59  ;;  %v1516_v2 = vsub.f32 %v66_v40, %v1468_v48  ;;  %v1520_v7 = vand.u32 4294901760, %v63_v58  ;;  %v1524_v8 = vsub.f32 %v65_v46, %v1484_v54  ;;  %v1529_v12 = vand.u32 4294901760, %v186_v56 }
  0x1e   :  { %111 = vmatpush.msra.mxu0 %v1392_v18  ;;  %164 = vmatpush.msra.mxu1 %v1458_v43  ;;  %v198_v13 = vsub.f32 %v1466_v47, %v1495_v57  ;;  %v1534_v17 = vand.u32 4294901760, %v1498_v59  ;;  %v96_v25 = vmul.f32 %v1504_v61, %v1504_v61  ;;  %v1538_v29 = vand.u32 4294901760, %v62_v1 }
  0x1f   :  { %269 = vmatpush.msra.mxu2 %v1419_v28  ;;  %324 = vmatpush.msra.mxu3 %v1392_v18  ;;  %1860 = vst [vmem:[#allocation19_spill] sm:$0xff] %v1516_v2  ;;  %v1542_v30 = vsub.f32 %v64_v52, %v1500_v60  ;;  %v97_v31 = vmul.f32 %v1518_v6, %v1518_v6  ;;  %v1549_v33 = vand.u32 4294901760, %v192_v63  ;;  %v1554_v40 = vand.u32 4294901760, %v1516_v2 }
  0x20   :  { %113 = vmatpush.msra.mxu0 %v1410_v24  ;;  %170 = vmatpush.msra.mxu1 %v1474_v49  ;;  %1862 = vst [vmem:[#allocation21_spill] sm:$0xff] %v1524_v8  ;;  %v204_v34 = vsub.f32 %v1482_v53, %v1513_v0  ;;  %v1556_v44 = vand.u32 4294901760, %v96_v25  ;;  %v1559_v46 = vand.u32 4294901760, %v1524_v8  ;;  %v1563_v50 = vsub.f32 %v63_v58, %v1520_v7 }
  0x21   :  { %272 = vmatpush.msra.mxu2 %v1438_v36  ;;  %326 = vmatpush.msra.mxu3 %v1410_v24  ;;  %v1568_v52 = vand.u32 4294901760, %v198_v13  ;;  %v210_v56 = vsub.f32 %v1498_v59, %v1534_v17  ;;  %v1573_v6 = vand.u32 4294901760, %v97_v31  ;;  %v1576_v61 = vand.u32 4294901760, %v1542_v30 }
  0x22   :  { %115 = vmatpush.msra.mxu0 %v1416_v27  ;;  %176 = vmatpush.msra.mxu1 %v1490_v55  ;;  %v131_v63 = vsub.f32 %v96_v25, %v1556_v44  ;;  %v1582_v58 = vand.u32 4294901760, %v204_v34  ;;  %v216_v13 = vsub.f32 %v1516_v2, %v1554_v40  ;;  %v1587_v25 = vsub.f32 %v62_v1, %v1538_v29 }
  0x23   :  { %275 = vmatpush.msra.mxu2 %v1451_v41  ;;  %328 = vmatpush.msra.mxu3 %v1416_v27  ;;  %v222_v41 = vsub.f32 %v1524_v8, %v1559_v46  ;;  %v1595_v34 = vand.u32 4294901760, %v210_v56  ;;  %v139_v1 = vsub.f32 %v97_v31, %v1573_v6  ;;  %v228_v56 = vsub.f32 %v1542_v30, %v1576_v61 }
  0x24   :  { %117 = vmatpush.msra.mxu0 %v1435_v35  ;;  %182 = vmatpush.msra.mxu1 %v1508_v62  ;;  %1863 = vst [vmem:[#allocation22_spill] sm:$0xff] %v1582_v58  ;;  %v1610_v28 = vand.u32 4294901760, %v1587_v25 }
  0x25   :  { %278 = vmatpush.msra.mxu2 %v1466_v47  ;;  %330 = vmatpush.msra.mxu3 %v1435_v35  ;;  %v132_v47 = vand.u32 4294901760, %v131_v63  ;;  %1864 = vst [vmem:[#allocation23_spill] sm:$0xff] %v1595_v34  ;;  %v1616_v31 = vand.u32 4294901760, %v222_v41 }
  0x26   :  { %119 = vmatpush.msra.mxu0 %v1453_v42  ;;  %188 = vmatpush.msra.mxu1 %v1529_v12 }
  0x27   :  { %281 = vmatpush.msra.mxu2 %v1482_v53  ;;  %332 = vmatpush.msra.mxu3 %v1453_v42  ;;  %v1598_v53 = vand.u32 4294901760, %v1563_v50  ;;  %v133_v36 = vsub.f32 %v131_v63, %v132_v47 }
  0x28   :  { %121 = vmatpush.msra.mxu0 %v1468_v48  ;;  %194 = vmatpush.msra.mxu1 %v1549_v33 }
  0x29   :  { %284 = vmatpush.msra.mxu2 %v1498_v59  ;;  %334 = vmatpush.msra.mxu3 %v1468_v48  ;;  %v1605_v59 = vand.u32 4294901760, %v216_v13  ;;  %v234_v13 = vsub.f32 %v1563_v50, %v1598_v53 }
  0x2a   :  { %123 = vmatpush.msra.mxu0 %v1484_v54  ;;  %200 = vmatpush.msra.mxu1 %v1568_v52 }
  0x2b   :  { %287 = vmatpush.msra.mxu2 %v1516_v2  ;;  %336 = vmatpush.msra.mxu3 %v1484_v54  ;;  %v134_v2 = vand.u32 4294901760, %v133_v36  ;;  %v1631_v36 = vand.u32 4294901760, %v234_v13 }
  0x2c   :  { %125 = vmatpush.msra.mxu0 %v1500_v60  ;;  %206 = vmatpush.msra.mxu1 %v1582_v58  ;;  %v140_v58 = vand.u32 4294901760, %v139_v1 }
  0x2d   :  { %290 = vmatpush.msra.mxu2 %v1524_v8  ;;  %338 = vmatpush.msra.mxu3 %v1500_v60  ;;  %v1624_v8 = vand.u32 4294901760, %v228_v56 }
  0x2e   :  { %127 = vmatpush.msra.mxu0 %v1520_v7  ;;  %212 = vmatpush.msra.mxu1 %v1595_v34  ;;  %v240_v34 = vsub.f32 %v1587_v25, %v1610_v28  ;;  %v141_v41 = vsub.f32 %v139_v1, %v140_v58 }
  0x2f   :  { %293 = vmatpush.msra.mxu2 %v1542_v30  ;;  %340 = vmatpush.msra.mxu3 %v1520_v7 }
  0x30   :  { %129 = vmatpush.msra.mxu0 %v1538_v29  ;;  %218 = vmatpush.msra.mxu1 %v1605_v59  ;;  %v1636_v56 = vand.u32 4294901760, %v240_v34  ;;  %v142_v13 = vand.u32 4294901760, %v141_v41  ;;  %v1163_v34 = vld [vmem:[#allocation7 + $0x18] sm:$0xff] }
  0x31   :  { %296 = vmatpush.msra.mxu2 %v1563_v50  ;;  %135 = vmatmul.f32.vlgmr.msra.gmra.mxu0 %v134_v2 }
  0x32   :  { %359 = vmatpush.msrb.mxu0 %v1402_v21  ;;  %224 = vmatpush.msra.mxu1 %v1616_v31 }
  0x33   :  { %299 = vmatpush.msra.mxu2 %v1587_v25  ;;  %342 = vmatpush.msra.mxu3 %v1538_v29 }
  0x34   :  { %363 = vmatpush.msrb.mxu0 %v1405_v22  ;;  %230 = vmatpush.msra.mxu1 %v1624_v8 }
  0x35   :  { %302 = vmatmul.f32.vlgmr.msra.gmra.mxu2 %v131_v63  ;;  %346 = vmatmul.f32.vlgmr.msra.gmra.mxu3 %v132_v47  ;;  %v1164_v63 = vld [vmem:[#allocation7 + $0x20] sm:$0xff] }
  0x36   :  { %367 = vmatpush.msrb.mxu0 %v1408_v23  ;;  %236 = vmatpush.msra.mxu1 %v1631_v36 }
  0x37   :  { %642 = vmatpush.msrb.mxu3 %v1369_v3 }
  0x38   :  { %371 = vmatpush.msrb.mxu0 %v1414_v26  ;;  %242 = vmatpush.msra.mxu1 %v1636_v56 }
  0x39   :  { %244 = vmatmul.f32.vlgmr.msra.gmra.mxu1 %v1556_v44  ;;  %143 = vmatmul.f32.gmra.mxu0 %v142_v13  ;;  %v1162_v13 = vld [vmem:[#allocation7 + $0x10] sm:$0xff] }
  0x3a   :  { %375 = vmatpush.msrb.mxu0 %v1430_v32  ;;  %430 = vmatpush.msrb.mxu1 %v1369_v3 }
  0x3b   :  { %644 = vmatpush.msrb.mxu3 %v1371_v4 }
  0x3c   :  { %379 = vmatpush.msrb.mxu0 %v1447_v39  ;;  %432 = vmatpush.msrb.mxu1 %v1371_v4 }
  0x3d   :  { %307 = vmatmul.f32.gmra.mxu2 %v139_v1  ;;  %352 = vmatmul.f32.gmra.mxu3 %v140_v58 }
  0x3e   :  { %383 = vmatpush.msrb.mxu0 %v1463_v45  ;;  %434 = vmatpush.msrb.mxu1 %v1373_v5 }
  0x3f   :  { %646 = vmatpush.msrb.mxu3 %v1373_v5 }
  0x40   :  { %387 = vmatpush.msrb.mxu0 %v1479_v51  ;;  %436 = vmatpush.msrb.mxu1 %v1375_v9 }
  0x41   :  { %248 = vmatmul.f32.gmra.mxu1 %v1573_v6  ;;  %648 = vmatpush.msrb.mxu3 %v1375_v9 }
  0x42   :  { %391 = vmatpush.msrb.mxu0 %v1495_v57  ;;  %438 = vmatpush.msrb.mxu1 %v1377_v10 }
  0x43   :  { %650 = vmatpush.msrb.mxu3 %v1377_v10 }
  0x44   :  { %395 = vmatpush.msrb.mxu0 %v1513_v0  ;;  %440 = vmatpush.msrb.mxu1 %v1379_v11 }
  0x45   :  { %652 = vmatpush.msrb.mxu3 %v1379_v11 }
  0x46   :  { %399 = vmatpush.msrb.mxu0 %v1534_v17  ;;  %442 = vmatpush.msrb.mxu1 %v1392_v18 }
  0x47   :  { %654 = vmatpush.msrb.mxu3 %v1392_v18 }
  0x48   :  { %403 = vmatpush.msrb.mxu0 %v1554_v40  ;;  %444 = vmatpush.msrb.mxu1 %v1410_v24 }
  0x49   :  { %656 = vmatpush.msrb.mxu3 %v1410_v24 }
  0x4a   :  { %407 = vmatpush.msrb.mxu0 %v1559_v46  ;;  %446 = vmatpush.msrb.mxu1 %v1416_v27 }
  0x4b   :  { %658 = vmatpush.msrb.mxu3 %v1416_v27 }
  0x4c   :  { %411 = vmatpush.msrb.mxu0 %v1576_v61  ;;  %448 = vmatpush.msrb.mxu1 %v1435_v35 }
  0x4d   :  { %660 = vmatpush.msrb.mxu3 %v1435_v35 }
  0x4e   :  { %415 = vmatpush.msrb.mxu0 %v1598_v53  ;;  %450 = vmatpush.msrb.mxu1 %v1453_v42 }
  0x4f   :  { %662 = vmatpush.msrb.mxu3 %v1453_v42 }
  0x50   :  { %419 = vmatpush.msrb.mxu0 %v1610_v28  ;;  %452 = vmatpush.msrb.mxu1 %v1468_v48 }
  0x51   :  { %421 = vmatmul.f32.vlgmr.msrb.gmra.mxu0 %v1556_v44  ;;  %664 = vmatpush.msrb.mxu3 %v1468_v48 }
  0x52   :  { %454 = vmatpush.msrb.mxu1 %v1484_v54  ;;  %695 = vmatpush.msra.mxu0 %v1442_v37 }
  0x53   :  { %666 = vmatpush.msrb.mxu3 %v1484_v54 }
  0x54   :  { %456 = vmatpush.msrb.mxu1 %v1500_v60  ;;  %701 = vmatpush.msra.mxu0 %v1444_v38 }
  0x55   :  { %668 = vmatpush.msrb.mxu3 %v1500_v60 }
  0x56   :  { %458 = vmatpush.msrb.mxu1 %v1520_v7  ;;  %707 = vmatpush.msra.mxu0 %v1458_v43 }
  0x57   :  { %670 = vmatpush.msrb.mxu3 %v1520_v7 }
  0x58   :  { %460 = vmatpush.msrb.mxu1 %v1538_v29  ;;  %713 = vmatpush.msra.mxu0 %v1474_v49 }
  0x59   :  { %425 = vmatmul.f32.gmra.mxu0 %v1573_v6  ;;  %462 = vmatmul.f32.vlgmr.msrb.gmra.mxu1 %v1556_v44 }
  0x5a   :  { %719 = vmatpush.msra.mxu0 %v1490_v55  ;;  %797 = vmatpush.msra.mxu1 %v1383_v14  ;;  %v1865_v14 = vld [vmem:[#allocation22_spill] sm:$0xff] }
  0x5b   :  { %672 = vmatpush.msrb.mxu3 %v1538_v29 }
  0x5c   :  { %725 = vmatpush.msra.mxu0 %v1508_v62  ;;  %800 = vmatpush.msra.mxu1 %v1386_v15  ;;  %v1866_v15 = vld [vmem:[#allocation12_spill] sm:$0xff] }
  0x5d   :  { %902 = vmatpush.msra.mxu3 %v1402_v21  ;;  %v1868_v21 = vld [vmem:[#allocation13_spill] sm:$0xff] }
  0x5e   :  { %731 = vmatpush.msra.mxu0 %v1529_v12  ;;  %803 = vmatpush.msra.mxu1 %v1389_v16  ;;  %v1867_v16 = vld [vmem:[#allocation23_spill] sm:$0xff]  ;;  %v1166_v12 = vld [vmem:[#allocation7 + $0x30] sm:$0xff] }
  0x5f   :  { %906 = vmatpush.msra.mxu3 %v1405_v22  ;;  %v1871_v22 = vld [vmem:[#allocation16_spill] sm:$0xff] }
  0x60   :  { %737 = vmatpush.msra.mxu0 %v1549_v33  ;;  %806 = vmatpush.msra.mxu1 %v1395_v19  ;;  %v1869_v19 = vld [vmem:[#allocation14_spill] sm:$0xff] }
  0x61   :  { %466 = vmatmul.f32.gmra.mxu1 %v1573_v6  ;;  %910 = vmatpush.msra.mxu3 %v1408_v23  ;;  %v1872_v23 = vld [vmem:[#allocation17_spill] sm:$0xff] }
  0x62   :  { %743 = vmatpush.msra.mxu0 %v1568_v52  ;;  %809 = vmatpush.msra.mxu1 %v1398_v20  ;;  %v1870_v20 = vld [vmem:[#allocation15_spill] sm:$0xff]  ;;  %v1167_v6 = vld [vmem:[#allocation7 + $0x38] sm:$0xff] }
  0x63   :  { %914 = vmatpush.msra.mxu3 %v1414_v26  ;;  %v1873_v26 = vld [vmem:[#allocation19_spill] sm:$0xff]  ;;  %619 = vmatpush.bf16.msrb.mxu2 %v1167_v6 }
  0x64   :  { %749 = vmatpush.msra.mxu0 %v1865_v14  ;;  %812 = vmatpush.msra.mxu1 %v1866_v15 }
  0x65   :  { %918 = vmatpush.msra.mxu3 %v1430_v32  ;;  %v1874_v32 = vld [vmem:[#allocation21_spill] sm:$0xff] }
  0x66   :  { %755 = vmatpush.msra.mxu0 %v1867_v16  ;;  %815 = vmatpush.msra.mxu1 %v1868_v21 }
  0x67   :  { %922 = vmatpush.msra.mxu3 %v1447_v39  ;;  %620 = vmatpush.bf16.msrb.mxu2 %v1166_v12 }
  0x68   :  { %761 = vmatpush.msra.mxu0 %v1605_v59  ;;  %818 = vmatpush.msra.mxu1 %v1869_v19 }
  0x69   :  { %926 = vmatpush.msra.mxu3 %v1463_v45 }
  0x6a   :  { %767 = vmatpush.msra.mxu0 %v1616_v31  ;;  %821 = vmatpush.msra.mxu1 %v1870_v20 }
  0x6b   :  { %930 = vmatpush.msra.mxu3 %v1479_v51 }
  0x6c   :  { %773 = vmatpush.msra.mxu0 %v1624_v8  ;;  %824 = vmatpush.msra.mxu1 %v1871_v22  ;;  %v1161_v22 = vld [vmem:[#allocation7 + $0x8] sm:$0xff] }
  0x6d   :  { %934 = vmatpush.msra.mxu3 %v1495_v57 }
  0x6e   :  { %779 = vmatpush.msra.mxu0 %v1631_v36  ;;  %827 = vmatpush.msra.mxu1 %v1872_v23 }
  0x6f   :  { %938 = vmatpush.msra.mxu3 %v1513_v0 }
  0x70   :  { %785 = vmatpush.msra.mxu0 %v1636_v56  ;;  %830 = vmatpush.msra.mxu1 %v1873_v26 }
  0x71   :  { %942 = vmatpush.msra.mxu3 %v1534_v17 }
  0x72   :  { %973 = vmatpush.msrb.mxu0 %v1369_v3  ;;  %833 = vmatpush.msra.mxu1 %v1874_v32 }
  0x73   :  { %946 = vmatpush.msra.mxu3 %v1554_v40  ;;  %v1165_v40 = vld [vmem:[#allocation7 + $0x28] sm:$0xff] }
  0x74   :  { %975 = vmatpush.msrb.mxu0 %v1371_v4  ;;  %836 = vmatpush.msra.mxu1 %v1542_v30 }
  0x75   :  { %950 = vmatpush.msra.mxu3 %v1559_v46  ;;  %621 = vmatpush.bf16.msrb.mxu2 %v1165_v40 }
  0x76   :  { %977 = vmatpush.msrb.mxu0 %v1373_v5  ;;  %839 = vmatpush.msra.mxu1 %v1563_v50 }
  0x77   :  { %954 = vmatpush.msra.mxu3 %v1576_v61 }
  0x78   :  { %979 = vmatpush.msrb.mxu0 %v1375_v9  ;;  %842 = vmatpush.msra.mxu1 %v1587_v25 }
  0x79   :  { %958 = vmatpush.msra.mxu3 %v1598_v53  ;;  %622 = vmatpush.bf16.msrb.mxu2 %v1164_v63 }
  0x7a   :  { %981 = vmatpush.msrb.mxu0 %v1377_v10  ;;  %1086 = vmatpush.bf16.msrb.mxu1 %v1167_v6 }
  0x7b   :  { %962 = vmatpush.msra.mxu3 %v1610_v28 }
  0x7c   :  { %983 = vmatpush.msrb.mxu0 %v1379_v11 }
  0x7d   :  { %623 = vmatpush.bf16.msrb.mxu2 %v1163_v34 }
  0x7e   :  { %985 = vmatpush.msrb.mxu0 %v1392_v18  ;;  %1087 = vmatpush.bf16.msrb.mxu1 %v1166_v12 }
  0x80   :  { %987 = vmatpush.msrb.mxu0 %v1410_v24 }
  0x81   :  { %624 = vmatpush.bf16.msrb.mxu2 %v1162_v13 }
  0x82   :  { %989 = vmatpush.msrb.mxu0 %v1416_v27  ;;  %1088 = vmatpush.bf16.msrb.mxu1 %v1165_v40 }
  0x84   :  { %991 = vmatpush.msrb.mxu0 %v1435_v35 }
  0x85   :  { %625 = vmatpush.bf16.msrb.mxu2 %v1161_v22 }
  0x86   :  { %993 = vmatpush.msrb.mxu0 %v1453_v42  ;;  %1089 = vmatpush.bf16.msrb.mxu1 %v1164_v63 }
  0x88   :  { %995 = vmatpush.msrb.mxu0 %v1468_v48 }
  0x8a   :  { %997 = vmatpush.msrb.mxu0 %v1484_v54  ;;  %1090 = vmatpush.bf16.msrb.mxu1 %v1163_v34 }
  0x8c   :  { %999 = vmatpush.msrb.mxu0 %v1500_v60 }
  0x8e   :  { %1001 = vmatpush.msrb.mxu0 %v1520_v7  ;;  %1091 = vmatpush.bf16.msrb.mxu1 %v1162_v13 }
  0x90   :  { %1003 = vmatpush.msrb.mxu0 %v1538_v29 }
  0x92   :  { %1092 = vmatpush.bf16.msrb.mxu1 %v1161_v22 }
  0xae   :  { %v136_v37 = vpop.f32.mrf.mxu0 }
  0xb6   :  { %v245_v28 = vpop.f32.mrf.mxu1  ;;  %v144_v38 = vpop.f32.mrf.mxu0 }
  0xb7   :  { %v246_v43 = vadd.f32 %v245_v28, %v136_v37  ;;  %v1160_v37 = vld [vmem:[#allocation7] sm:$0xff] }
  0xb8   :  { %v303_v39 = vpop.f32.mrf.mxu2  ;;  %v347_v45 = vpop.f32.mrf.mxu3  ;;  %626 = vmatpush.bf16.msrb.mxu2 %v1160_v37  ;;  %1093 = vmatpush.bf16.msrb.mxu1 %v1160_v37 }
  0xb9   :  { %v304_v49 = vadd.f32 %v303_v39, %v246_v43 }
  0xbb   :  { %v348_v53 = vadd.f32 %v347_v45, %v304_v49 }
  0xbc   :  { %855 = vmatpush.msra.mxu2 %v1369_v3 }
  0xbe   :  { %v249_v47 = vpop.f32.mrf.mxu1  ;;  %857 = vmatpush.msra.mxu2 %v1371_v4 }
  0xbf   :  { %v250_v55 = vadd.f32 %v249_v47, %v144_v38 }
  0xc0   :  { %v308_v57 = vpop.f32.mrf.mxu2  ;;  %v353_v2 = vpop.f32.mrf.mxu3  ;;  %859 = vmatpush.msra.mxu2 %v1373_v5 }
  0xc1   :  { %v309_v62 = vadd.f32 %v308_v57, %v250_v55 }
  0xc2   :  { %861 = vmatpush.msra.mxu2 %v1375_v9 }
  0xc3   :  { %v354_v17 = vadd.f32 %v353_v2, %v309_v62 }
  0xc4   :  { %863 = vmatpush.msra.mxu2 %v1377_v10 }
  0xc6   :  { %865 = vmatpush.msra.mxu2 %v1379_v11 }
  0xc8   :  { %867 = vmatpush.msra.mxu2 %v1392_v18 }
  0xca   :  { %869 = vmatpush.msra.mxu2 %v1410_v24 }
  0xcc   :  { %871 = vmatpush.msra.mxu2 %v1416_v27 }
  0xce   :  { %v422_v51 = vpop.f32.mrf.mxu0  ;;  %873 = vmatpush.msra.mxu2 %v1435_v35 }
  0xcf   :  { %v423_v59 = vadd.f32 %v422_v51, %v348_v53 }
  0xd0   :  { %875 = vmatpush.msra.mxu2 %v1453_v42 }
  0xd2   :  { %877 = vmatpush.msra.mxu2 %v1468_v48 }
  0xd4   :  { %879 = vmatpush.msra.mxu2 %v1484_v54 }
  0xd6   :  { %v463_v61 = vpop.f32.mrf.mxu1  ;;  %v426_v8 = vpop.f32.mrf.mxu0  ;;  %881 = vmatpush.msra.mxu2 %v1500_v60 }
  0xd7   :  { %v464_v0 = vadd.f32 %v463_v61, %v423_v59  ;;  %v427_v30 = vadd.f32 %v426_v8, %v354_v17 }
  0xd8   :  { %883 = vmatpush.msra.mxu2 %v1520_v7 }
  0xd9   :  { %1192 = vrsqrt.f32 %v464_v0  ;;  %vm477_vm0 = vcmp.eq.f32.partialorder %v464_v0, inf  ;;  %v480_v14 = vand.u32 2147483648, %v464_v0  ;;  %vm479_vm1 = vcmp.eq.f32.partialorder %v464_v0, 0.0 }
  0xda   :  { %885 = vmatpush.msra.mxu2 %v1538_v29 }
  0xde   :  { %v467_v33 = vpop.f32.mrf.mxu1 }
  0xdf   :  { %v1193_v44 = vpop.eup %1192  ;;  %v468_v46 = vadd.f32 %v467_v33, %v427_v30 }
  0xe0   :  { %v471_v50 = vmul.f32 %v1193_v44, %v464_v0 }
  0xe1   :  { %1194 = vrsqrt.f32 %v468_v46  ;;  %vm489_vm2 = vcmp.eq.f32.partialorder %v468_v46, inf  ;;  %v492_v28 = vand.u32 2147483648, %v468_v46  ;;  %vm491_vm3 = vcmp.eq.f32.partialorder %v468_v46, 0.0 }
  0xe2   :  { %v472_v52 = vmul.f32 %v1193_v44, %v471_v50 }
  0xe4   :  { %v473_v58 = vmul.f32 0.5, %v472_v52 }
  0xe6   :  { %v474_v25 = vsub.f32 1.5, %v473_v58 }
  0xe7   :  { %v1195_v1 = vpop.eup %1194 }
  0xe8   :  { %v475_v31 = vmul.f32 %v1193_v44, %v474_v25  ;;  %v483_v36 = vmul.f32 %v1195_v1, %v468_v46 }
  0xea   :  { %v476_v41 = vmul.f32 %v475_v31, %v464_v0  ;;  %v484_v56 = vmul.f32 %v1195_v1, %v483_v36 }
  0xec   :  { %v478_v15 = vsel %vm477_vm0, %v464_v0, %v476_v41  ;;  %v485_v16 = vmul.f32 0.5, %v484_v56 }
  0xed   :  { %v481_v21 = vsel %vm479_vm1, %v480_v14, %v478_v15 }
  0xee   :  { %v1757_v19 = vmax.f32 %v481_v21, 1e-15  ;;  %v486_v20 = vsub.f32 1.5, %v485_v16 }
  0xf0   :  { %v487_v23 = vmul.f32 %v1195_v1, %v486_v20  ;;  %v524_v26 = vmin.f32 %v1757_v19, 0.9999999  ;;  %v507_v22 = vand.u32 2147483648, %v1757_v19  ;;  %vm501_vm13 = vweird.f32 %v1757_v19 }
  0xf2   :  { %v488_v32 = vmul.f32 %v487_v23, %v468_v46  ;;  %v528_v38 = vsub.f32 1.0, %v524_v26  ;;  %v526_v12 = vadd.f32 1.0, %v524_v26  ;;  %v505_v23 = vand.u32 2147483647, %v1757_v19 }
  0xf4   :  { %v490_v39 = vsel %vm489_vm2, %v468_v46, %v488_v32  ;;  %1196 = vrcp.f32 %v528_v38  ;;  %v541_v57 = vand.u32 2147483648, %v528_v38  ;;  %v539_v61 = vand.u32 2147483647, %v528_v38 }
  0xf5   :  { %v493_v43 = vsel %vm491_vm3, %v492_v28, %v490_v39  ;;  %1198 = vrcp.f32 %v1757_v19  ;;  %vm535_vm5 = vweird.f32 %v528_v38  ;;  %vm506_vm2 = vcmp.eq.f32.partialorder %v505_v23, 8.507059e+37 }
  0xf6   :  { %v1760_v45 = vmax.f32 %v493_v43, 1e-15  ;;  %v542_v6 = vor.u32 1.1754944e-38, %v541_v57  ;;  %vm540_vm7 = vcmp.eq.f32.partialorder %v539_v61, 8.507059e+37 }
  0xf8   :  { %v525_v47 = vmin.f32 %v1760_v45, 0.9999999  ;;  %v521_v32 = vand.u32 2147483648, %v1760_v45  ;;  %vm515_vm0 = vweird.f32 %v1760_v45  ;;  %v519_v28 = vand.u32 2147483647, %v1760_v45 }
  0xfa   :  { %v1197_v49 = vpop.eup %1196  ;;  %v529_v51 = vsub.f32 1.0, %v525_v47  ;;  %v527_v36 = vadd.f32 1.0, %v525_v47  ;;  %vm520_vm3 = vcmp.eq.f32.partialorder %v519_v28, 8.507059e+37 }
  0xfb   :  { %v531_v53 = vmul.f32 %v1197_v49, %v528_v38  ;;  %vm536_vm4 = vweird.f32 %v1197_v49  ;;  %v1771_v62 = vpop.eup %1198 }
  0xfc   :  { %1200 = vrcp.f32 %v529_v51  ;;  %vm537_vm6 = vmor %vm535_vm5, %vm536_vm4  ;;  %v497_v33 = vmul.f32 %v1771_v62, %v1757_v19  ;;  %v555_v52 = vand.u32 2147483648, %v529_v51  ;;  %v553_v58 = vand.u32 2147483647, %v529_v51 }
  0xfd   :  { %1202 = vrcp.f32 %v1760_v45  ;;  %v532_v55 = vsub.f32 1.0, %v531_v53  ;;  %vm549_vm9 = vweird.f32 %v529_v51  ;;  %vm502_vm12 = vweird.f32 %v1771_v62 }
  0xfe   :  { %v498_v25 = vsub.f32 1.0, %v497_v33  ;;  %v556_v31 = vor.u32 1.1754944e-38, %v555_v52  ;;  %vm554_vm11 = vcmp.eq.f32.partialorder %v553_v58, 8.507059e+37  ;;  %vm503_vm15 = vmor %vm501_vm13, %vm502_vm12  ;;  %v508_v19 = vor.u32 1.1754944e-38, %v507_v22 }
  0xff   :  { %v533_v59 = vmul.f32 %v1197_v49, %v532_v55 }
 0x100   :  { %v499_v56 = vmul.f32 %v1771_v62, %v498_v25 }
 0x101   :  { %v534_v0 = vadd.f32 %v1197_v49, %v533_v59 }
 0x102   :  { %v1201_v2 = vpop.eup %1200  ;;  %v500_v21 = vadd.f32 %v1771_v62, %v499_v56 }
 0x103   :  { %v1774_v8 = vpop.eup %1202  ;;  %v538_v17 = vsel %vm537_vm6, %v1197_v49, %v534_v0  ;;  %v545_v30 = vmul.f32 %v1201_v2, %v529_v51  ;;  %vm550_vm8 = vweird.f32 %v1201_v2  ;;  %v522_v51 = vor.u32 1.1754944e-38, %v521_v32 }
 0x104   :  { %v543_v40 = vsel %vm540_vm7, %v542_v6, %v538_v17  ;;  %v511_v50 = vmul.f32 %v1774_v8, %v1760_v45  ;;  %vm551_vm10 = vmor %vm549_vm9, %vm550_vm8  ;;  %vm516_vm14 = vweird.f32 %v1774_v8  ;;  %v504_v37 = vsel %vm503_vm15, %v1771_v62, %v500_v21 }
 0x105   :  { %v546_v44 = vsub.f32 1.0, %v545_v30  ;;  %v558_v46 = vmul.f32 %v543_v40, %v526_v12  ;;  %vm517_vm1 = vmor %vm515_vm0, %vm516_vm14  ;;  %v509_v49 = vsel %vm506_vm2, %v508_v19, %v504_v37 }
 0x106   :  { %v512_v1 = vsub.f32 1.0, %v511_v50 }
 0x107   :  { %v547_v63 = vmul.f32 %v1201_v2, %v546_v44  ;;  %1204 = vlog2.f32 %v558_v46 }
 0x108   :  { %v513_v16 = vmul.f32 %v1774_v8, %v512_v1 }
 0x109   :  { %v548_v34 = vadd.f32 %v1201_v2, %v547_v63 }
 0x10a   :  { %v514_v26 = vadd.f32 %v1774_v8, %v513_v16 }
 0x10b   :  { %v552_v41 = vsel %vm551_vm10, %v1201_v2, %v548_v34 }
 0x10c   :  { %v557_v13 = vsel %vm554_vm11, %v556_v31, %v552_v41  ;;  %v518_v43 = vsel %vm517_vm1, %v1774_v8, %v514_v26 }
 0x10d   :  { %v1205_v14 = vpop.eup %1204  ;;  %v559_v15 = vmul.f32 %v557_v13, %v527_v36  ;;  %v523_v57 = vsel %vm520_vm3, %v522_v51, %v518_v43 }
 0x10e   :  { %v561_v20 = vmul.f32 0.6931472, %v1205_v14 }
 0x10f   :  { %1206 = vlog2.f32 %v559_v15 }
 0x110   :  { %v564_v38 = vmul.f32 0.5, %v561_v20 }
 0x112   :  { %v566_v55 = vmul.f32 %v564_v38, %v509_v49 }
 0x114   :  { %v1124_v61 = vadd.f32 -1.0, %v566_v55 }
 0x115   :  { %v1207_v39 = vpop.eup %1206 }
 0x116   :  { %v563_v47 = vmul.f32 0.6931472, %v1207_v39 }
 0x118   :  { %v565_v53 = vmul.f32 0.5, %v563_v47 }
 0x11a   :  { %v567_v59 = vmul.f32 %v565_v53, %v523_v57 }
 0x11c   :  { %v1125_v62 = vadd.f32 -1.0, %v567_v59 }
 0x11e   :  { %v570_v45 = vpack.c.bf16 %v1125_v62, %v1124_v61 }
 0x120   :  { %627 = vmatmul.bf16.vlgmr.msrb.gmra.mxu2 %v570_v45 }
 0x121   :  { %1168 = vmatpush.msrb.mxu2 %v1369_v3 }
 0x123   :  { %1169 = vmatpush.msrb.mxu2 %v1371_v4 }
 0x125   :  { %1170 = vmatpush.msrb.mxu2 %v1373_v5  ;;  %v1875_v5 = vld [vmem:[#allocation18_spill] sm:$0xff] }
 0x127   :  { %1171 = vmatpush.msrb.mxu2 %v1375_v9 }
 0x129   :  { %1172 = vmatpush.msrb.mxu2 %v1377_v10 }
 0x12b   :  { %1173 = vmatpush.msrb.mxu2 %v1379_v11 }
 0x12d   :  { %1174 = vmatpush.msrb.mxu2 %v1392_v18 }
 0x12f   :  { %1175 = vmatpush.msrb.mxu2 %v1410_v24 }
 0x131   :  { %1176 = vmatpush.msrb.mxu2 %v1416_v27 }
 0x133   :  { %1177 = vmatpush.msrb.mxu2 %v1435_v35  ;;  %v1876_v35 = vld [vmem:[#allocation20_spill] sm:$0xff] }
 0x135   :  { %1178 = vmatpush.msrb.mxu2 %v1453_v42 }
 0x137   :  { %1179 = vmatpush.msrb.mxu2 %v1468_v48 }
 0x139   :  { %1180 = vmatpush.msrb.mxu2 %v1484_v54 }
 0x13b   :  { %1181 = vmatpush.msrb.mxu2 %v1500_v60 }
 0x13d   :  { %1182 = vmatpush.msrb.mxu2 %v1520_v7 }
 0x13f   :  { %1183 = vmatpush.msrb.mxu2 %v1538_v29 }
 0x1a3   :  { %v628_v3 = vpop.f32.mrf.mxu2 }
 0x1a4   :  { %v629_v4 = vadd.f32 1.0, %v628_v3 }
 0x1a6   :  { %v633_v9 = vmul.f32 %v629_v4, %v1875_v5 }
 0x1a8   :  { %v635_v10 = vmax.f32 %v633_v9, 0.0 }
 0x1aa   :  { %v1820_v11 = vmin.f32 %v635_v10, 1000000.0 }
 0x1ab   :  { %v630_v18 = vpop.f32.mrf.mxu2 }
 0x1ac   :  { %v639_v24 = vmul.f32 %v1820_v11, %v1820_v11  ;;  %v631_v27 = vadd.f32 1.0, %v630_v18 }
 0x1ae   :  { %v634_v42 = vmul.f32 %v631_v27, %v1876_v35  ;;  %v673_v48 = vand.u32 4294901760, %v639_v24 }
 0x1b0   :  { %v636_v54 = vmax.f32 %v634_v42, 0.0  ;;  %787 = vmatmul.f32.vlgmr.msra.gmra.mxu0 %v673_v48  ;;  %v674_v60 = vsub.f32 %v639_v24, %v673_v48 }
 0x1b2   :  { %v1825_v7 = vmin.f32 %v636_v54, 1000000.0  ;;  %845 = vmatmul.f32.vlgmr.msra.gmra.mxu1 %v674_v60  ;;  %v675_v29 = vand.u32 4294901760, %v674_v60 }
 0x1b4   :  { %v640_v0 = vmul.f32 %v1825_v7, %v1825_v7  ;;  %889 = vmatmul.f32.vlgmr.msra.gmra.mxu2 %v675_v29  ;;  %v676_v2 = vsub.f32 %v674_v60, %v675_v29 }
 0x1b6   :  { %v677_v6 = vand.u32 4294901760, %v676_v2  ;;  %v681_v8 = vand.u32 4294901760, %v640_v0 }
 0x1b8   :  { %678 = vmatmul.f32.vlgmr.msrb.gmra.mxu3 %v677_v6  ;;  %791 = vmatmul.f32.gmra.mxu0 %v681_v8  ;;  %v682_v12 = vsub.f32 %v640_v0, %v681_v8 }
 0x1ba   :  { %850 = vmatmul.f32.gmra.mxu1 %v682_v12  ;;  %v683_v17 = vand.u32 4294901760, %v682_v12 }
 0x1bc   :  { %895 = vmatmul.f32.gmra.mxu2 %v683_v17  ;;  %v684_v30 = vsub.f32 %v682_v12, %v683_v17 }
 0x1be   :  { %v685_v33 = vand.u32 4294901760, %v684_v30 }
 0x1c0   :  { %686 = vmatmul.f32.gmra.mxu3 %v685_v33  ;;  %1005 = vmatmul.f32.vlgmr.msrb.gmra.mxu0 %v673_v48 }
 0x1c4   :  { %1009 = vmatmul.f32.vlgmr.msrb.gmra.mxu2 %v681_v8 }
 0x1c8   :  { %964 = vmatmul.f32.vlgmr.msra.gmra.mxu3 %v673_v48 }
 0x1d0   :  { %968 = vmatmul.f32.gmra.mxu3 %v681_v8 }
 0x22d   :  { %v788_v40 = vpop.f32.mrf.mxu0 }
 0x22f   :  { %v846_v50 = vpop.f32.mrf.mxu1 }
 0x235   :  { %v792_v63 = vpop.f32.mrf.mxu0 }
 0x237   :  { %v890_v46 = vpop.f32.mrf.mxu2  ;;  %v851_v56 = vpop.f32.mrf.mxu1 }
 0x23b   :  { %v679_v44 = vpop.f32.mrf.mxu3 }
 0x23c   :  { %v789_v52 = vadd.f32 %v788_v40, %v679_v44 }
 0x23d   :  { %v1006_v13 = vpop.f32.mrf.mxu0 }
 0x23e   :  { %v847_v25 = vadd.f32 %v846_v50, %v789_v52 }
 0x23f   :  { %v896_v31 = vpop.f32.mrf.mxu2 }
 0x240   :  { %v891_v1 = vadd.f32 %v890_v46, %v847_v25 }
 0x243   :  { %v687_v58 = vpop.f32.mrf.mxu3 }
 0x244   :  { %v793_v34 = vadd.f32 %v792_v63, %v687_v58 }
 0x246   :  { %v852_v14 = vadd.f32 %v851_v56, %v793_v34 }
 0x247   :  { %v1010_v22 = vpop.f32.mrf.mxu2 }
 0x248   :  { %v897_v16 = vadd.f32 %v896_v31, %v852_v14 }
 0x24b   :  { %v965_v36 = vpop.f32.mrf.mxu3 }
 0x24c   :  { %v966_v41 = vadd.f32 %v965_v36, %v891_v1 }
 0x24e   :  { %v1007_v15 = vadd.f32 %v1006_v13, %v966_v41 }
 0x250   :  { %1208 = vrsqrt.f32 %v1007_v15  ;;  %vm1020_vm4 = vcmp.eq.f32.partialorder %v1007_v15, inf  ;;  %v1023_v51 = vand.u32 2147483648, %v1007_v15  ;;  %vm1022_vm5 = vcmp.eq.f32.partialorder %v1007_v15, 0.0 }
 0x253   :  { %v969_v21 = vpop.f32.mrf.mxu3 }
 0x254   :  { %v970_v20 = vadd.f32 %v969_v21, %v897_v16 }
 0x256   :  { %v1209_v23 = vpop.eup %1208  ;;  %v1011_v26 = vadd.f32 %v1010_v22, %v970_v20 }
 0x257   :  { %v1014_v32 = vmul.f32 %v1209_v23, %v1007_v15 }
 0x258   :  { %1210 = vrsqrt.f32 %v1011_v26  ;;  %vm1032_vm6 = vcmp.eq.f32.partialorder %v1011_v26, inf  ;;  %v1035_v3 = vand.u32 2147483648, %v1011_v26  ;;  %vm1034_vm7 = vcmp.eq.f32.partialorder %v1011_v26, 0.0 }
 0x259   :  { %v1015_v37 = vmul.f32 %v1209_v23, %v1014_v32 }
 0x25b   :  { %v1016_v28 = vmul.f32 0.5, %v1015_v37 }
 0x25d   :  { %v1017_v38 = vsub.f32 1.5, %v1016_v28 }
 0x25e   :  { %v1211_v39 = vpop.eup %1210 }
 0x25f   :  { %v1018_v19 = vmul.f32 %v1209_v23, %v1017_v38  ;;  %v1026_v43 = vmul.f32 %v1211_v39, %v1011_v26 }
 0x261   :  { %v1019_v47 = vmul.f32 %v1018_v19, %v1007_v15  ;;  %v1027_v49 = vmul.f32 %v1211_v39, %v1026_v43 }
 0x263   :  { %v1021_v53 = vsel %vm1020_vm4, %v1007_v15, %v1019_v47  ;;  %v1028_v55 = vmul.f32 0.5, %v1027_v49 }
 0x264   :  { %v1024_v57 = vsel %vm1022_vm5, %v1023_v51, %v1021_v53 }
 0x265   :  { %v1037_v59 = vmax.f32 %v1024_v57, 1e-15  ;;  %v1029_v61 = vsub.f32 1.5, %v1028_v55 }
 0x267   :  { %1212 = vrcp.f32 %v1037_v59  ;;  %v1030_v62 = vmul.f32 %v1211_v39, %v1029_v61  ;;  %v1050_v54 = vand.u32 2147483648, %v1037_v59  ;;  %vm1044_vm9 = vweird.f32 %v1037_v59 }
 0x268   :  { %1214 = vtanh.f32 %v1037_v59  ;;  %v1048_v29 = vand.u32 2147483647, %v1037_v59 }
 0x269   :  { %v1031_v45 = vmul.f32 %v1030_v62, %v1011_v26  ;;  %v1051_v17 = vor.u32 1.1754944e-38, %v1050_v54 }
 0x26a   :  { %vm1049_vm11 = vcmp.eq.f32.partialorder %v1048_v29, 8.507059e+37 }
 0x26b   :  { %v1033_v4 = vsel %vm1032_vm6, %v1011_v26, %v1031_v45 }
 0x26c   :  { %v1036_v5 = vsel %vm1034_vm7, %v1035_v3, %v1033_v4 }
 0x26d   :  { %v1213_v9 = vpop.eup %1212  ;;  %v1038_v10 = vmax.f32 %v1036_v5, 1e-15 }
 0x26e   :  { %v1215_v18 = vpop.eup %1214  ;;  %v1040_v24 = vmul.f32 %v1213_v9, %v1037_v59  ;;  %vm1045_vm8 = vweird.f32 %v1213_v9 }
 0x26f   :  { %1216 = vrcp.f32 %v1038_v10  ;;  %v1071_v35 = vmax.f32 %v1215_v18, 1e-15  ;;  %vm1046_vm10 = vmor %vm1044_vm9, %vm1045_vm8  ;;  %v1062_v33 = vand.u32 2147483647, %v1038_v10  ;;  %v1064_v40 = vand.u32 2147483648, %v1038_v10 }
 0x270   :  { %v1041_v27 = vsub.f32 1.0, %v1040_v24  ;;  %1218 = vtanh.f32 %v1038_v10  ;;  %vm1058_vm13 = vweird.f32 %v1038_v10 }
 0x271   :  { %1220 = vrcp.f32 %v1071_v35  ;;  %v1065_v63 = vor.u32 1.1754944e-38, %v1064_v40  ;;  %vm1073_vm15 = vcmp.gt.f32.partialorder %v1071_v35, 0.996  ;;  %vm1063_vm0 = vcmp.eq.f32.partialorder %v1062_v33, 8.507059e+37 }
 0x272   :  { %v1042_v42 = vmul.f32 %v1213_v9, %v1041_v27 }
 0x274   :  { %v1043_v48 = vadd.f32 %v1213_v9, %v1042_v42 }
 0x275   :  { %v1217_v60 = vpop.eup %1216 }
 0x276   :  { %v1219_v0 = vpop.eup %1218  ;;  %v1054_v2 = vmul.f32 %v1217_v60, %v1038_v10  ;;  %v1047_v6 = vsel %vm1046_vm10, %v1213_v9, %v1043_v48  ;;  %vm1059_vm12 = vweird.f32 %v1217_v60 }
 0x277   :  { %v1072_v8 = vmax.f32 %v1219_v0, 1e-15  ;;  %v1221_v12 = vpop.eup %1220  ;;  %v1052_v44 = vsel %vm1049_vm11, %v1051_v17, %v1047_v6  ;;  %vm1060_vm14 = vmor %vm1058_vm13, %vm1059_vm12 }
 0x278   :  { %v1055_v30 = vsub.f32 1.0, %v1054_v2  ;;  %v1077_v50 = vmul.f32 0.996, %v1221_v12  ;;  %v1069_v58 = vmul.f32 %v1215_v18, %v1052_v44 }
 0x279   :  { %1222 = vrcp.f32 %v1072_v8  ;;  %vm1074_vm1 = vcmp.gt.f32.partialorder %v1072_v8, 0.996 }
 0x27a   :  { %v1056_v46 = vmul.f32 %v1217_v60, %v1055_v30  ;;  %v1079_v34 = vsel %vm1073_vm15, %v1077_v50, 1.0 }
 0x27b   :  { %v1081_v56 = vmul.f32 %v1079_v34, %v1069_v58 }
 0x27c   :  { %v1057_v52 = vadd.f32 %v1217_v60, %v1056_v46 }
 0x27d   :  { %v1158_v15 = vadd.f32 -1.0, %v1081_v56 }
 0x27e   :  { %v1061_v25 = vsel %vm1060_vm14, %v1217_v60, %v1057_v52 }
 0x27f   :  { %v1223_v1 = vpop.eup %1222  ;;  %v1066_v31 = vsel %vm1063_vm0, %v1065_v63, %v1061_v25 }
 0x280   :  { %v1070_v36 = vmul.f32 %v1219_v0, %v1066_v31  ;;  %v1078_v41 = vmul.f32 0.996, %v1223_v1 }
 0x282   :  { %v1080_v13 = vsel %vm1074_vm1, %v1078_v41, 1.0 }
 0x283   :  { %v1082_v14 = vmul.f32 %v1080_v13, %v1070_v36 }
 0x285   :  { %v1159_v16 = vadd.f32 -1.0, %v1082_v14 }
 0x287   :  { %v1085_v21 = vpack.c.bf16 %v1159_v16, %v1158_v15 }
 0x289   :  { %1094 = vmatmul.bf16.vlgmr.msrb.gmra.mxu1 %v1085_v21 }
 0x306   :  { %v1095_v20 = vpop.f32.mrf.mxu1 }
 0x307   :  { %v1096_v22 = vadd.f32 1.0, %v1095_v20 }
 0x309   :  { %v1100_v23 = vmul.f32 %v1096_v22, %v1820_v11 }
 0x30b   :  { %1102 = vst [vmem:[#allocation8] sm:$0xff] %v1100_v23 }
 0x30e   :  { %v1097_v26 = vpop.f32.mrf.mxu1 }
 0x30f   :  { %v1098_v32 = vadd.f32 1.0, %v1097_v26 }
 0x311   :  { %v1101_v37 = vmul.f32 %v1098_v32, %v1825_v7 }
 0x313   :  { %1103 = vst [vmem:[#allocation8 + $0x8] sm:$0xff] %v1101_v37 }
 0x314   :  { %1116 = dma.vmem_to_hbm [thread:$0]  %s1109_s29, 256, %s1111_s5, [#allocation4], %s1327_s20, %s1327_s20, %s1328_s21  }
 0x315   :  { %1324 = dma.done.wait [#allocation4], 256  }
 0x316   :  { %1325 = vsyncadd [#allocation4], 4294967040 }
 0x317   :  { %1121 = vsyncpa [#allocation3], 1 }
 0x318   :  { %1122 = vsyncpa [#allocation6], 1 }
 0x319   :  { %1123 = vsyncpa [#allocation4], 1 }

</bundles_post_ra>
